<compile_context>
chip_gen: v5e
topology: v5e:2x2
jax: 0.10.0
libtpu: 0.0.40
codegen_flags: <defaults>
</compile_context>

<pallas_src>
import math

import jax
import jax.numpy as jnp
from jax.experimental import pallas as pl
from jax.experimental.pallas import tpu as pltpu


def make_pe(seqlen: int, dmodel: int, dtype=jnp.float32) -> jnp.ndarray:
    """Build the (1, seqlen, dmodel) sinusoidal table, matching the torch code.

    Build it once at module init in the activation dtype so the forward path
    never re-slices / re-casts pe.
    """
    pos = jnp.arange(0.0, seqlen, dtype=jnp.float32)[:, None]          # (S, 1)
    pos = jnp.tile(pos, (1, dmodel))                                    # (S, D)
    dim = jnp.arange(0.0, dmodel, dtype=jnp.float32)[None, :]           # (1, D)
    dim = jnp.tile(dim, (seqlen, 1))                                    # (S, D)
    div = jnp.exp(-math.log(10000.0) * (2.0 * jnp.floor(dim / 2.0) / dmodel))
    p = pos * div
    col = jnp.arange(dmodel)
    pe = jnp.where((col % 2 == 0)[None, :], jnp.sin(p), jnp.cos(p))     # (S, D)
    return pe[None, :, :].astype(dtype)                                 # (1, S, D)


def _add_pe_kernel(x_ref, pe_ref, o_ref):
    # x_ref/o_ref: (Bt, TS, TD) tiles; pe_ref: (1, TS, TD) broadcast over batch.
    o_ref[...] = x_ref[...] + pe_ref[...]


def _round_up(v: int, m: int) -> int:
    return ((v + m - 1) // m) * m


def _choose_tiling(B: int, S: int, D: int, itemsize: int, budget: int):
    """Pick (batch_block, seq_tile, lane_tile) under a per-buffer byte budget."""
    # Packed sublane multiple: 8 rows (f32), 16 (bf16/f16), 32 (int8/fp8).
    m = max(8, 32 // itemsize)
    budget = max(budget, m * 128 * itemsize)  # never below one minimal tile

    # 1) Lane-axis (D) tiling fallback for very large D (VMEM safety).
    if D % 128 == 0 and D * itemsize * m > budget:
        n_d = pl.cdiv(D * itemsize * m, budget)
        td = min(D, _round_up(pl.cdiv(D, n_d), 128))
    else:
        td = D
    row_bytes = td * itemsize

    # 2) Balanced sequence tiling rounded to the sublane multiple.
    if S * row_bytes <= budget:
        ts = S
    else:
        n_s = pl.cdiv(S * row_bytes, budget)
        ts = min(S, _round_up(pl.cdiv(S, n_s), m))

    # 3) Fold batch into the block while it still fits the per-buffer budget.
    slab = ts * row_bytes
    bt = max(1, min(B, budget // max(1, slab)))
    while B % bt != 0:                  # keep leading blocks full (no masking)
        bt -= 1

    # 4) Guarantee >= 2 grid steps for non-trivial work so both TensorCores of
    #    a dual-core chip (v7x) can share the streaming add.
    n_s, n_d, n_b = pl.cdiv(S, ts), pl.cdiv(D, td), B // bt
    if n_s * n_d * n_b < 2 and B * S * D * itemsize >= (1 << 20):
        half = min(S, _round_up(pl.cdiv(S, 2), m))
        if half < S:
            ts = half
        elif B >= 2:
            bt = max(1, B // 2)
            while B % bt != 0:
                bt -= 1
    return bt, ts, td


def _add_pe_call(x: jnp.ndarray, pe: jnp.ndarray, *, target_tile_bytes: int):
    B, S, D = x.shape
    itemsize = jnp.dtype(x.dtype).itemsize
    bt, ts, td = _choose_tiling(B, S, D, itemsize, target_tile_bytes)
    n_s, n_d, n_b = pl.cdiv(S, ts), pl.cdiv(D, td), pl.cdiv(B, bt)

    # Explicit scoped-VMEM limit: double-buffered (x + out + pe) blocks plus
    # headroom for compiler-internal scratch. Stays under v7x's 64 MiB physical
    # VMEM and avoids v5e's 16 MiB default-limit compile failures.
    block_bytes = (2 * bt + 1) * ts * td * itemsize
    vmem_limit = int(min(48 << 20, max(16 << 20, 2 * block_bytes + (8 << 20))))

    cost = pl.CostEstimate(
        flops=B * S * D,
        transcendentals=0,
        bytes_accessed=(2 * B * S * D + S * D) * itemsize,
    )
    return pl.pallas_call(
        _add_pe_kernel,
        out_shape=jax.ShapeDtypeStruct((B, S, D), x.dtype),
        grid_spec=pltpu.PrefetchScalarGridSpec(
            num_scalar_prefetch=0,
            # Batch innermost: the pe block index repeats across consecutive
            # steps, so its DMA is skipped (revisit reuse).
            grid=(n_s, n_d, n_b),
            in_specs=[
                pl.BlockSpec((bt, ts, td), lambda s, d, b: (b, s, d)),
                pl.BlockSpec((1, ts, td), lambda s, d, b: (0, s, d)),
            ],
            out_specs=pl.BlockSpec((bt, ts, td), lambda s, d, b: (b, s, d)),
        ),
        compiler_params=pltpu.CompilerParams(
            dimension_semantics=("parallel", "parallel", "parallel"),
            vmem_limit_bytes=vmem_limit,
        ),
        cost_estimate=cost,
    )(x, pe)


def static_position_embedding(
    x: jnp.ndarray,
    pe: jnp.ndarray,
    *,
    target_tile_bytes: int = 4 * 1024 * 1024,
) -> jnp.ndarray:
    """x: (B, S, D); pe: (1, seqlen, D) with seqlen >= S. Returns x + pe[:, :S, :]."""
    B, S, D = x.shape
    # Callers should build pe with make_pe(seqlen, D, dtype=x.dtype) once at
    # init; then both fixups below are no-ops (no extra HBM pass over pe).
    if pe.shape[1] != S:
        pe = pe[:, :S, :]
    if pe.dtype != x.dtype:
        pe = pe.astype(x.dtype)

    # Lane-dense folding: if D under-fills / misaligns the 128-lane axis but
    # the flattened row count folds cleanly, reshape so the last dim is 128
    # (unmasked vst instead of masked vst.msk — biggest output-side lever).
    if D % 128 != 0 and (S * D) % 128 == 0:
        Sf, Df = (S * D) // 128, 128
        out = _add_pe_call(
            x.reshape(B, Sf, Df),
            pe.reshape(1, Sf, Df),
            target_tile_bytes=target_tile_bytes,
        )
        return out.reshape(B, S, D)
    # TODO(synk): pad D up to a multiple of 128 for shapes where neither D nor
    # S*D is lane-aligned (e.g. D=96 with odd S) to avoid masked stores.
    return _add_pe_call(x, pe, target_tile_bytes=target_tile_bytes)


if __name__ == "__main__":
    key = jax.random.PRNGKey(0)
    k1, k2, k3 = jax.random.split(key, 3)

    # Case 1: module-scale shapes (D=32 exercises the lane-dense folding path
    # and the batch-folded single-step grid).
    B, S, D = 2, 8, 32
    seqlen = 16
    pe = make_pe(seqlen, D)
    x = jax.random.normal(k1, (B, S, D), dtype=jnp.float32)
    out = jax.block_until_ready(static_position_embedding(x, pe))
    ref = x + pe[:, :S, :]
    assert out.shape == (B, S, D)
    assert jnp.allclose(out, ref, atol=1e-6, rtol=1e-6)

    # Case 2: tiled-sequence path with a partial trailing tile (S=56, TS=16)
    # and a lane-aligned D, forced via a small per-buffer budget.
    B2, S2, D2 = 2, 56, 128
    pe2 = make_pe(64, D2)
    x2 = jax.random.normal(k2, (B2, S2, D2), dtype=jnp.float32)
    out2 = jax.block_until_ready(
        static_position_embedding(x2, pe2, target_tile_bytes=16 * 128 * 4)
    )
    ref2 = x2 + pe2[:, :S2, :]
    assert out2.shape == (B2, S2, D2)
    assert jnp.allclose(out2, ref2, atol=1e-6, rtol=1e-6)

    # Case 3: bf16 activations with pe prebuilt in bf16 at "init" (no per-call
    # cast); exercises dtype-aware sublane rounding (tile multiple of 16).
    B3, S3, D3 = 4, 40, 128
    pe3 = make_pe(64, D3, dtype=jnp.bfloat16)
    x3 = jax.random.normal(k3, (B3, S3, D3), dtype=jnp.bfloat16)
    out3 = jax.block_until_ready(
        static_position_embedding(x3, pe3, target_tile_bytes=16 * 128 * 2)
    )
    ref3 = x3 + pe3[:, :S3, :]
    assert out3.shape == (B3, S3, D3)
    assert jnp.allclose(
        out3.astype(jnp.float32), ref3.astype(jnp.float32), atol=1e-2, rtol=1e-2
    )

    print("KERNEL_OK")
</pallas_src>

<mosaic_0001>
module attributes {stable_mosaic.version = 11 : i64} {
  func.func @_add_pe_kernel(%arg0: i32, %arg1: i32, %arg2: i32, %arg3: memref<2x2x128xf32, #tpu.memory_space<vmem>>, %arg4: memref<1x2x128xf32, #tpu.memory_space<vmem>>, %arg5: memref<2x2x128xf32, #tpu.memory_space<vmem>>) attributes {dimension_semantics = [#tpu.dimension_semantics<parallel>, #tpu.dimension_semantics<parallel>, #tpu.dimension_semantics<parallel>], iteration_bounds = array<i64: 1, 1, 1>, scalar_prefetch = 0 : i64, scratch_operands = 0 : i64, tpu.core_type = #tpu.core_type<tc>, window_params = [{transform_indices = @transform_0, window_bounds = array<i64: 2, 2, 128>}, {transform_indices = @transform_1, window_bounds = array<i64: 1, 2, 128>}, {transform_indices = @transform_2, window_bounds = array<i64: 2, 2, 128>}]} {
    %c0 = arith.constant 0 : index
    %c0_0 = arith.constant 0 : index
    %c0_1 = arith.constant 0 : index
    %0 = vector.load %arg3[%c0, %c0_0, %c0_1] : memref<2x2x128xf32, #tpu.memory_space<vmem>>, vector<2x2x128xf32>
    %c0_2 = arith.constant 0 : index
    %c0_3 = arith.constant 0 : index
    %c0_4 = arith.constant 0 : index
    %1 = vector.load %arg4[%c0_2, %c0_3, %c0_4] : memref<1x2x128xf32, #tpu.memory_space<vmem>>, vector<1x2x128xf32>
    %2 = vector.broadcast %1 : vector<1x2x128xf32> to vector<2x2x128xf32>
    %3 = arith.addf %0, %2 : vector<2x2x128xf32>
    %c0_5 = arith.constant 0 : index
    %c0_6 = arith.constant 0 : index
    %c0_7 = arith.constant 0 : index
    %4 = vector.load %arg5[%c0_5, %c0_6, %c0_7] : memref<2x2x128xf32, #tpu.memory_space<vmem>>, vector<2x2x128xf32>
    tpu.vector_store %arg5[%c0_5, %c0_6, %c0_7], %3 {strides = array<i32>} : memref<2x2x128xf32, #tpu.memory_space<vmem>>, vector<2x2x128xf32>,
    return
  }
  func.func @transform_0(%arg0: i32, %arg1: i32, %arg2: i32) -> (i32, i32, i32) {
    %c0_i32 = arith.constant 0 : i32
    return %arg2, %arg0, %arg1 : i32, i32, i32
  }
  func.func @transform_1(%arg0: i32, %arg1: i32, %arg2: i32) -> (i32, i32, i32) {
    %c0_i32 = arith.constant 0 : i32
    %c0_i32_0 = arith.constant 0 : i32
    return %c0_i32, %arg0, %arg1 : i32, i32, i32
  }
  func.func @transform_2(%arg0: i32, %arg1: i32, %arg2: i32) -> (i32, i32, i32) {
    %c0_i32 = arith.constant 0 : i32
    return %arg2, %arg0, %arg1 : i32, i32, i32
  }
}

</mosaic_0001>

<bundles_post_ra>
// kernel: tpu_custom_call.1
= control target key start
LH: loop header
LB: loop body
LE: loop exit
PB: predicated region body
PF: predicated region fallthrough
CT: control target
= control target key end

     0   :  { %7 = vsyncpa [#allocation3], 0  ;;  %s181_s0 = inlined_call_operand.hbm [shape: f32[2,2,128], index: 0, kind: input, shape index: {}]   ;;  %s182_s1 = inlined_call_operand.hbm [shape: f32[1,2,128], index: 1, kind: input, shape index: {}]   ;;  %s183_s2 = inlined_call_operand.hbm [shape: f32[2,2,128], index: 2, kind: output, shape index: {}]  }
   0x1   :  { %8 = vsyncpa [#allocation6], 0 }
   0x2   :  { %9 = vsyncpa [#allocation4], 0  ;;  %s14_s11 = sshll.u32 %s181_s0, 4  ;;  %s152_s12 = smov [#allocation2]   ;;  %s15_s11 = int_to_ptr.hbm [resolvable:$true] %s14_s11 }
   0x3   :  { %s16_s13 = sshll.u32 %s152_s12, 4  ;;  %s28_s16 = sshll.u32 %s182_s1, 4  ;;  %s17_s13 = int_to_ptr.vmem [resolvable:$true] %s16_s13  ;;  %s29_s16 = int_to_ptr.hbm [resolvable:$true] %s28_s16 }
   0x4   :  { %s153_s17 = smov 32   ;;  %s154_s18 = smov 2  }
   0x5   :  { %22 = dma.hbm_to_vmem [thread:$0]  %s15_s11, 64, %s17_s13, [#allocation3], %s153_s17, %s153_s17, %s154_s18  }
   0x6   :  { %s155_s19 = smov [#allocation5]  }
   0x7   :  { %s30_s20 = sshll.u32 %s155_s19, 4  ;;  %s31_s20 = int_to_ptr.vmem [resolvable:$true] %s30_s20 }
   0x8   :  { %33 = dma.hbm_to_vmem [thread:$0]  %s29_s16, 32, %s31_s20, [#allocation6]  }
   0x9   :  { %146 = dma.done.wait [#allocation3], 64  }
   0xa   :  { %147 = vsyncadd [#allocation3], 4294967232 }
   0xb   :  { %148 = dma.done.wait [#allocation6], 32  }
   0xc   :  { %149 = vsyncadd [#allocation6], 4294967264  ;;  %s156_s0 = smov [#allocation7]   ;;  %s55_s24 = sshll.u32 %s183_s2, 4  ;;  %v42_v0 = vld [vmem:[#allocation2] sm:$0x3]  ;;  %s56_s24 = int_to_ptr.hbm [resolvable:$true] %s55_s24 }
   0xd   :  { %s53_s21 = sshll.u32 %s156_s0, 4  ;;  %v44_v1 = vld [vmem:[#allocation5] sm:$0x3]  ;;  %v43_v2 = vld [vmem:[#allocation2 + $0x2] sm:$0x3]  ;;  %s54_s21 = int_to_ptr.vmem [resolvable:$true] %s53_s21 }
   0xe   :  { %v45_v3 = vadd.f32 %v44_v1, %v42_v0  ;;  %v46_v4 = vadd.f32 %v44_v1, %v43_v2 }
  0x10   :  { %47 = vst [vmem:[#allocation7] sm:$0x3] %v45_v3 }
  0x11   :  { %48 = vst [vmem:[#allocation7 + $0x2] sm:$0x3] %v46_v4 }
  0x12   :  { %61 = dma.vmem_to_hbm [thread:$0]  %s54_s21, 64, %s56_s24, [#allocation4], %s153_s17, %s153_s17, %s154_s18  }
  0x13   :  { %150 = dma.done.wait [#allocation4], 64  }
  0x14   :  { %151 = vsyncadd [#allocation4], 4294967232 }
  0x15   :  { %66 = vsyncpa [#allocation3], 1 }
  0x16   :  { %67 = vsyncpa [#allocation6], 1 }
  0x17   :  { %68 = vsyncpa [#allocation4], 1 }

</bundles_post_ra>
